<compile_context>
chip_gen: v5e
topology: v5e:2x2
jax: 0.10.0
libtpu: 0.0.40
codegen_flags: <defaults>
</compile_context>

<pallas_src>
import jax
import jax.numpy as jnp
from jax.experimental import pallas as pl
from jax.experimental.pallas import tpu as pltpu


def actor_kernel(obs_ref, act_ref, w_obs_ref, w_act_ref, b1_ref,
                 w2_ref, b2_ref, w3_ref, b3_ref, mask_ref, mu_ref):
    # Layer 1 (fused fold of the 100x action repeat): relu(obs@Wo + act@Wa + b1)
    x1 = (jnp.dot(obs_ref[...], w_obs_ref[...], preferred_element_type=jnp.float32)
          + jnp.dot(act_ref[...], w_act_ref[...], preferred_element_type=jnp.float32)
          + b1_ref[...])
    x1 = jnp.maximum(x1, 0.0)

    # Layer 2: Linear + ReLU
    x2 = jnp.dot(x1, w2_ref[...], preferred_element_type=jnp.float32) + b2_ref[...]
    x2 = jnp.maximum(x2, 0.0)

    # Layer 3: Linear (output padded to 128 lanes) + tanh + offset mask
    mu = jnp.dot(x2, w3_ref[...], preferred_element_type=jnp.float32) + b3_ref[...]
    mu_ref[...] = jnp.tanh(mu) * mask_ref[...]


def prepare_params(params, offset_mask, repr_dim, action_dim, a_pad=128):
    """One-time (outside the hot path) weight preparation.

    Folds the 100x action repeat into layer-1 weights and pads the output
    projection / bias / mask to a lane-dense width.
    """
    w1, b1, w2, b2, w3, b3 = params
    hidden_dim = w1.shape[1]

    w_obs = w1[:repr_dim]                                                  # [repr, H]
    w_act = w1[repr_dim:].reshape(100, action_dim, hidden_dim).sum(axis=0)  # [A, H]

    w3p = jnp.zeros((hidden_dim, a_pad), jnp.float32).at[:, :action_dim].set(w3)
    b3p = jnp.zeros((1, a_pad), jnp.float32).at[0, :action_dim].set(b3)
    maskp = jnp.zeros((1, a_pad), jnp.float32).at[0, :action_dim].set(
        offset_mask.astype(jnp.float32))

    return (w_obs, w_act,
            b1.reshape(1, hidden_dim).astype(jnp.float32),
            w2.astype(jnp.float32),
            b2.reshape(1, hidden_dim).astype(jnp.float32),
            w3p, b3p, maskp)


def actor_forward(obs, action, std, prepped):
    """Returns (mu, std) of the Actor's output TruncatedNormal."""
    w_obs, w_act, b1, w2, b2, w3p, b3p, maskp = prepped

    B = obs.shape[0]
    REPR = w_obs.shape[0]
    A = w_act.shape[0]
    H = w2.shape[0]
    A_PAD = w3p.shape[1]

    # Batch tile: 128 when cleanly divisible (auto double-buffered activation
    # DMA, parallel across v7x TensorCores); otherwise one full-B block.
    TB = 128 if (B >= 128 and B % 128 == 0) else B
    grid = (pl.cdiv(B, TB),)

    row_map = lambda i: (i, 0)   # tiled along batch
    res_map = lambda i: (0, 0)   # weights resident in VMEM across grid steps

    cost = pl.CostEstimate(
        flops=int(2 * B * (REPR * H + A * H + H * H + H * A_PAD)),
        transcendentals=int(B * A_PAD),
        bytes_accessed=int(4 * (B * (REPR + A + A_PAD)
                                + REPR * H + A * H + H * H + H * A_PAD
                                + 2 * H + 2 * A_PAD)),
    )

    mu_pad = pl.pallas_call(
        actor_kernel,
        out_shape=jax.ShapeDtypeStruct((B, A_PAD), jnp.float32),
        grid=grid,
        in_specs=[
            pl.BlockSpec((TB, REPR), row_map),    # obs
            pl.BlockSpec((TB, A), row_map),       # action
            pl.BlockSpec((REPR, H), res_map),     # w_obs
            pl.BlockSpec((A, H), res_map),        # w_act (folded repeat)
            pl.BlockSpec((1, H), res_map),        # b1
            pl.BlockSpec((H, H), res_map),        # w2
            pl.BlockSpec((1, H), res_map),        # b2
            pl.BlockSpec((H, A_PAD), res_map),    # w3 (lane-padded)
            pl.BlockSpec((1, A_PAD), res_map),    # b3 (lane-padded)
            pl.BlockSpec((1, A_PAD), res_map),    # offset mask (lane-padded)
        ],
        out_specs=pl.BlockSpec((TB, A_PAD), row_map),
        compiler_params=pltpu.CompilerParams(
            dimension_semantics=("parallel",)),
        cost_estimate=cost,
    )(obs.astype(jnp.float32), action.astype(jnp.float32),
      w_obs, w_act, b1, w2, b2, w3p, b3p, maskp)

    mu = mu_pad[:, :A]
    # std = ones_like(mu) * std * offset_mask  -- batch-independent broadcast,
    # computed outside the kernel.
    std_out = jnp.broadcast_to(jnp.float32(std) * maskp[0, :A], (B, A))
    return mu, std_out


def make_params(key, repr_dim, action_dim, hidden_dim):
    d_in = repr_dim + action_dim * 100
    k1, k2, k3 = jax.random.split(key, 3)
    w1 = jax.random.normal(k1, (d_in, hidden_dim), jnp.float32) * (1.0 / jnp.sqrt(d_in))
    b1 = jnp.zeros((hidden_dim,), jnp.float32)
    w2 = jax.random.normal(k2, (hidden_dim, hidden_dim), jnp.float32) * (1.0 / jnp.sqrt(hidden_dim))
    b2 = jnp.zeros((hidden_dim,), jnp.float32)
    w3 = jax.random.normal(k3, (hidden_dim, action_dim), jnp.float32) * (1.0 / jnp.sqrt(hidden_dim))
    b3 = jnp.zeros((action_dim,), jnp.float32)
    return (w1, b1, w2, b2, w3, b3)


def reference_forward(obs, action, std, params, offset_mask):
    """Pure-JAX reference matching the PyTorch semantics (unfolded weights)."""
    w1, b1, w2, b2, w3, b3 = params
    h = jnp.concatenate([obs, jnp.tile(action, (1, 100))], axis=1)
    x = jnp.maximum(h @ w1 + b1, 0.0)
    x = jnp.maximum(x @ w2 + b2, 0.0)
    mu = x @ w3 + b3
    mu = jnp.tanh(mu) * offset_mask
    std_out = jnp.ones_like(mu) * std * offset_mask
    return mu, std_out


if __name__ == "__main__":
    # Small shapes consistent with the module:
    #   batch=2, repr_dim=32, action_dim=4 (=> torch concat dim 32+400=432), hidden=64
    B, REPR, ACT, HID = 2, 32, 4, 64

    key = jax.random.PRNGKey(0)
    k_obs, k_act, k_par = jax.random.split(key, 3)

    obs = jax.random.normal(k_obs, (B, REPR), jnp.float32)
    action = jax.random.normal(k_act, (B, ACT), jnp.float32)
    std = 0.2
    offset_mask = jnp.array([1.0, 0.0, 1.0, 1.0], jnp.float32)  # synthetic mask

    params = make_params(k_par, REPR, ACT, HID)
    prepped = prepare_params(params, offset_mask, REPR, ACT)

    mu, std_out = actor_forward(obs, action, std, prepped)
    mu = jax.block_until_ready(mu)
    std_out = jax.block_until_ready(std_out)

    mu_ref, std_ref = reference_forward(obs, action, std, params, offset_mask)
    assert mu.shape == (B, ACT) and std_out.shape == (B, ACT)
    assert jnp.allclose(mu, mu_ref, atol=5e-5, rtol=5e-5), "mu mismatch"
    assert jnp.allclose(std_out, std_ref, atol=1e-6, rtol=1e-6), "std mismatch"

    print("KERNEL_OK")
</pallas_src>

<mosaic_0001>
module attributes {stable_mosaic.version = 11 : i64} {
  func.func @actor_kernel(%arg0: i32, %arg1: memref<2x32xf32, #tpu.memory_space<vmem>>, %arg2: memref<2x4xf32, #tpu.memory_space<vmem>>, %arg3: memref<32x64xf32, #tpu.memory_space<vmem>>, %arg4: memref<4x64xf32, #tpu.memory_space<vmem>>, %arg5: memref<1x64xf32, #tpu.memory_space<vmem>>, %arg6: memref<64x64xf32, #tpu.memory_space<vmem>>, %arg7: memref<1x64xf32, #tpu.memory_space<vmem>>, %arg8: memref<64x128xf32, #tpu.memory_space<vmem>>, %arg9: memref<1x128xf32, #tpu.memory_space<vmem>>, %arg10: memref<1x128xf32, #tpu.memory_space<vmem>>, %arg11: memref<2x128xf32, #tpu.memory_space<vmem>>) attributes {dimension_semantics = [#tpu.dimension_semantics<parallel>], iteration_bounds = array<i64: 1>, scalar_prefetch = 0 : i64, scratch_operands = 0 : i64, tpu.core_type = #tpu.core_type<tc>, window_params = [{transform_indices = @transform_0, window_bounds = array<i64: 2, 32>}, {transform_indices = @transform_1, window_bounds = array<i64: 2, 4>}, {pipeline_mode = #tpu.pipeline_mode<synchronous>, transform_indices = @transform_2, window_bounds = array<i64: 32, 64>}, {pipeline_mode = #tpu.pipeline_mode<synchronous>, transform_indices = @transform_3, window_bounds = array<i64: 4, 64>}, {pipeline_mode = #tpu.pipeline_mode<synchronous>, transform_indices = @transform_4, window_bounds = array<i64: 1, 64>}, {pipeline_mode = #tpu.pipeline_mode<synchronous>, transform_indices = @transform_5, window_bounds = array<i64: 64, 64>}, {pipeline_mode = #tpu.pipeline_mode<synchronous>, transform_indices = @transform_6, window_bounds = array<i64: 1, 64>}, {pipeline_mode = #tpu.pipeline_mode<synchronous>, transform_indices = @transform_7, window_bounds = array<i64: 64, 128>}, {pipeline_mode = #tpu.pipeline_mode<synchronous>, transform_indices = @transform_8, window_bounds = array<i64: 1, 128>}, {pipeline_mode = #tpu.pipeline_mode<synchronous>, transform_indices = @transform_9, window_bounds = array<i64: 1, 128>}, {transform_indices = @transform_10, window_bounds = array<i64: 2, 128>}]} {
    %c0 = arith.constant 0 : index
    %c0_0 = arith.constant 0 : index
    %0 = vector.load %arg1[%c0, %c0_0] : memref<2x32xf32, #tpu.memory_space<vmem>>, vector<2x32xf32>
    %c0_1 = arith.constant 0 : index
    %c0_2 = arith.constant 0 : index
    %1 = vector.load %arg3[%c0_1, %c0_2] : memref<32x64xf32, #tpu.memory_space<vmem>>, vector<32x64xf32>
    %cst = arith.constant dense<0.000000e+00> : vector<2x64xf32>
    %2 = tpu.matmul %0, %1, %cst {dimension_numbers = #tpu.dot_dimension_numbers<[1], [0], [0], [1], [0, 0, 1, 1], [], []>} : vector<2x32xf32>, vector<32x64xf32>, vector<2x64xf32> -> vector<2x64xf32>
    %c0_3 = arith.constant 0 : index
    %c0_4 = arith.constant 0 : index
    %3 = vector.load %arg2[%c0_3, %c0_4] : memref<2x4xf32, #tpu.memory_space<vmem>>, vector<2x4xf32>
    %c0_5 = arith.constant 0 : index
    %c0_6 = arith.constant 0 : index
    %4 = vector.load %arg4[%c0_5, %c0_6] : memref<4x64xf32, #tpu.memory_space<vmem>>, vector<4x64xf32>
    %cst_7 = arith.constant dense<0.000000e+00> : vector<2x64xf32>
    %5 = tpu.matmul %3, %4, %cst_7 {dimension_numbers = #tpu.dot_dimension_numbers<[1], [0], [0], [1], [0, 0, 1, 1], [], []>} : vector<2x4xf32>, vector<4x64xf32>, vector<2x64xf32> -> vector<2x64xf32>
    %6 = arith.addf %2, %5 : vector<2x64xf32>
    %c0_8 = arith.constant 0 : index
    %c0_9 = arith.constant 0 : index
    %7 = vector.load %arg5[%c0_8, %c0_9] : memref<1x64xf32, #tpu.memory_space<vmem>>, vector<1x64xf32>
    %8 = vector.broadcast %7 : vector<1x64xf32> to vector<2x64xf32>
    %9 = arith.addf %6, %8 : vector<2x64xf32>
    %cst_10 = arith.constant 0.000000e+00 : f32
    %10 = vector.broadcast %cst_10 : f32 to vector<2x64xf32>
    %11 = arith.maximumf %9, %10 : vector<2x64xf32>
    %c0_11 = arith.constant 0 : index
    %c0_12 = arith.constant 0 : index
    %12 = vector.load %arg6[%c0_11, %c0_12] : memref<64x64xf32, #tpu.memory_space<vmem>>, vector<64x64xf32>
    %cst_13 = arith.constant dense<0.000000e+00> : vector<2x64xf32>
    %13 = tpu.matmul %11, %12, %cst_13 {dimension_numbers = #tpu.dot_dimension_numbers<[1], [0], [0], [1], [0, 0, 1, 1], [], []>} : vector<2x64xf32>, vector<64x64xf32>, vector<2x64xf32> -> vector<2x64xf32>
    %c0_14 = arith.constant 0 : index
    %c0_15 = arith.constant 0 : index
    %14 = vector.load %arg7[%c0_14, %c0_15] : memref<1x64xf32, #tpu.memory_space<vmem>>, vector<1x64xf32>
    %15 = vector.broadcast %14 : vector<1x64xf32> to vector<2x64xf32>
    %16 = arith.addf %13, %15 : vector<2x64xf32>
    %cst_16 = arith.constant 0.000000e+00 : f32
    %17 = vector.broadcast %cst_16 : f32 to vector<2x64xf32>
    %18 = arith.maximumf %16, %17 : vector<2x64xf32>
    %c0_17 = arith.constant 0 : index
    %c0_18 = arith.constant 0 : index
    %19 = vector.load %arg8[%c0_17, %c0_18] : memref<64x128xf32, #tpu.memory_space<vmem>>, vector<64x128xf32>
    %cst_19 = arith.constant dense<0.000000e+00> : vector<2x128xf32>
    %20 = tpu.matmul %18, %19, %cst_19 {dimension_numbers = #tpu.dot_dimension_numbers<[1], [0], [0], [1], [0, 0, 1, 1], [], []>} : vector<2x64xf32>, vector<64x128xf32>, vector<2x128xf32> -> vector<2x128xf32>
    %c0_20 = arith.constant 0 : index
    %c0_21 = arith.constant 0 : index
    %21 = vector.load %arg9[%c0_20, %c0_21] : memref<1x128xf32, #tpu.memory_space<vmem>>, vector<1x128xf32>
    %22 = vector.broadcast %21 : vector<1x128xf32> to vector<2x128xf32>
    %23 = arith.addf %20, %22 : vector<2x128xf32>
    %24 = math.tanh %23 : vector<2x128xf32>
    %c0_22 = arith.constant 0 : index
    %c0_23 = arith.constant 0 : index
    %25 = vector.load %arg10[%c0_22, %c0_23] : memref<1x128xf32, #tpu.memory_space<vmem>>, vector<1x128xf32>
    %26 = vector.broadcast %25 : vector<1x128xf32> to vector<2x128xf32>
    %27 = arith.mulf %24, %26 : vector<2x128xf32>
    %c0_24 = arith.constant 0 : index
    %c0_25 = arith.constant 0 : index
    %28 = vector.load %arg11[%c0_24, %c0_25] : memref<2x128xf32, #tpu.memory_space<vmem>>, vector<2x128xf32>
    tpu.vector_store %arg11[%c0_24, %c0_25], %27 {strides = array<i32>} : memref<2x128xf32, #tpu.memory_space<vmem>>, vector<2x128xf32>,
    return
  }
  func.func @transform_0(%arg0: i32) -> (i32, i32) {
    %c0_i32 = arith.constant 0 : i32
    %c0_i32_0 = arith.constant 0 : i32
    return %arg0, %c0_i32 : i32, i32
  }
  func.func @transform_1(%arg0: i32) -> (i32, i32) {
    %c0_i32 = arith.constant 0 : i32
    %c0_i32_0 = arith.constant 0 : i32
    return %arg0, %c0_i32 : i32, i32
  }
  func.func @transform_2(%arg0: i32) -> (i32, i32) {
    %c0_i32 = arith.constant 0 : i32
    %c0_i32_0 = arith.constant 0 : i32
    %c0_i32_1 = arith.constant 0 : i32
    return %c0_i32, %c0_i32_0 : i32, i32
  }
  func.func @transform_3(%arg0: i32) -> (i32, i32) {
    %c0_i32 = arith.constant 0 : i32
    %c0_i32_0 = arith.constant 0 : i32
    %c0_i32_1 = arith.constant 0 : i32
    return %c0_i32, %c0_i32_0 : i32, i32
  }
  func.func @transform_4(%arg0: i32) -> (i32, i32) {
    %c0_i32 = arith.constant 0 : i32
    %c0_i32_0 = arith.constant 0 : i32
    %c0_i32_1 = arith.constant 0 : i32
    return %c0_i32, %c0_i32_0 : i32, i32
  }
  func.func @transform_5(%arg0: i32) -> (i32, i32) {
    %c0_i32 = arith.constant 0 : i32
    %c0_i32_0 = arith.constant 0 : i32
    %c0_i32_1 = arith.constant 0 : i32
    return %c0_i32, %c0_i32_0 : i32, i32
  }
  func.func @transform_6(%arg0: i32) -> (i32, i32) {
    %c0_i32 = arith.constant 0 : i32
    %c0_i32_0 = arith.constant 0 : i32
    %c0_i32_1 = arith.constant 0 : i32
    return %c0_i32, %c0_i32_0 : i32, i32
  }
  func.func @transform_7(%arg0: i32) -> (i32, i32) {
    %c0_i32 = arith.constant 0 : i32
    %c0_i32_0 = arith.constant 0 : i32
    %c0_i32_1 = arith.constant 0 : i32
    return %c0_i32, %c0_i32_0 : i32, i32
  }
  func.func @transform_8(%arg0: i32) -> (i32, i32) {
    %c0_i32 = arith.constant 0 : i32
    %c0_i32_0 = arith.constant 0 : i32
    %c0_i32_1 = arith.constant 0 : i32
    return %c0_i32, %c0_i32_0 : i32, i32
  }
  func.func @transform_9(%arg0: i32) -> (i32, i32) {
    %c0_i32 = arith.constant 0 : i32
    %c0_i32_0 = arith.constant 0 : i32
    %c0_i32_1 = arith.constant 0 : i32
    return %c0_i32, %c0_i32_0 : i32, i32
  }
  func.func @transform_10(%arg0: i32) -> (i32, i32) {
    %c0_i32 = arith.constant 0 : i32
    %c0_i32_0 = arith.constant 0 : i32
    return %arg0, %c0_i32 : i32, i32
  }
}

</mosaic_0001>

<bundles_post_ra>
// kernel: tpu_custom_call.1
= control target key start
LH: loop header
LB: loop body
LE: loop exit
PB: predicated region body
PF: predicated region fallthrough
CT: control target
= control target key end

     0   :  { %15 = vsyncpa [#allocation3], 0  ;;  %s583_s0 = inlined_call_operand.hbm [shape: f32[2,32], index: 0, kind: input, shape index: {}]   ;;  %s584_s1 = inlined_call_operand.hbm [shape: f32[2,4], index: 1, kind: input, shape index: {}]   ;;  %s585_s2 = inlined_call_operand.hbm [shape: f32[32,64], index: 2, kind: input, shape index: {}]   ;;  %s586_s3 = inlined_call_operand.hbm [shape: f32[4,64], index: 3, kind: input, shape index: {}]   ;;  %s587_s4 = inlined_call_operand.vmem [shape: f32[1,64], index: 4, kind: input, shape index: {}]   ;;  %s588_s5 = inlined_call_operand.hbm [shape: f32[64,64], index: 5, kind: input, shape index: {}]   ;;  %s589_s6 = inlined_call_operand.vmem [shape: f32[1,64], index: 6, kind: input, shape index: {}]   ;;  %s590_s7 = inlined_call_operand.hbm [shape: f32[64,128], index: 7, kind: input, shape index: {}]   ;;  %s591_s8 = inlined_call_operand.vmem [shape: f32[1,128], index: 8, kind: input, shape index: {}]   ;;  %s592_s9 = inlined_call_operand.vmem [shape: f32[1,128], index: 9, kind: input, shape index: {}]   ;;  %s593_s10 = inlined_call_operand.hbm [shape: f32[2,128], index: 10, kind: output, shape index: {}]  }
   0x1   :  { %16 = vsyncpa [#allocation6], 0 }
   0x2   :  { %17 = vsyncpa [#allocation9], 0 }
   0x3   :  { %18 = vsyncpa [#allocation12], 0  ;;  %s36_s15 = sshll.u32 %s584_s1, 4  ;;  %s37_s15 = int_to_ptr.hbm [resolvable:$true] %s36_s15 }
   0x4   :  { %19 = vsyncpa [#allocation4], 0  ;;  %s486_s16 = smov [#allocation5]   ;;  %s60_s20 = sshll.u32 %s586_s3, 4  ;;  %s61_s20 = int_to_ptr.hbm [resolvable:$true] %s60_s20 }
   0x5   :  { %s38_s17 = sshll.u32 %s486_s16, 4  ;;  %s487_s21 = smov [#allocation8]   ;;  %s39_s17 = int_to_ptr.vmem [resolvable:$true] %s38_s17 }
   0x6   :  { %41 = dma.hbm_to_vmem [thread:$0]  %s37_s15, 32, %s39_s17, [#allocation6]  }
   0x7   :  { %s62_s22 = sshll.u32 %s487_s21, 4  ;;  %s25_s25 = sshll.u32 %s583_s0, 4  ;;  %s63_s22 = int_to_ptr.vmem [resolvable:$true] %s62_s22  ;;  %s26_s25 = int_to_ptr.hbm [resolvable:$true] %s25_s25 }
   0x8   :  { %65 = dma.hbm_to_vmem [thread:$0]  %s61_s20, 64, %s63_s22, [#allocation9]  }
   0x9   :  { %s46_s27 = sshll.u32 %s585_s2, 4  ;;  %s488_s28 = smov [#allocation2]   ;;  %s47_s27 = int_to_ptr.hbm [resolvable:$true] %s46_s27 }
   0xa   :  { %s27_s29 = sshll.u32 %s488_s28, 4  ;;  %s489_s3 = smov [#allocation7]   ;;  %s28_s29 = int_to_ptr.vmem [resolvable:$true] %s27_s29 }
   0xb   :  { %30 = dma.hbm_to_vmem [thread:$0]  %s26_s25, 32, %s28_s29, [#allocation3]  }
   0xc   :  { %s48_s30 = sshll.u32 %s489_s3, 4  ;;  %s490_s11 = smov 128   ;;  %s49_s30 = int_to_ptr.vmem [resolvable:$true] %s48_s30 }
   0xd   :  { %s491_s12 = smov 8   ;;  %s72_s14 = sshll.u32 %s588_s5, 4  ;;  %s73_s14 = int_to_ptr.hbm [resolvable:$true] %s72_s14 }
   0xe   :  { %54 = dma.hbm_to_vmem [thread:$0]  %s47_s27, 512, %s49_s30, [#allocation6], %s490_s11, %s490_s11, %s491_s12  }
   0xf   :  { %s492_s15 = smov [#allocation10]   ;;  %s87_s18 = sshll.u32 %s590_s7, 4  ;;  %s88_s18 = int_to_ptr.hbm [resolvable:$true] %s87_s18 }
  0x10   :  { %s74_s16 = sshll.u32 %s492_s15, 4  ;;  %s493_s19 = smov [#allocation11]   ;;  %s75_s16 = int_to_ptr.vmem [resolvable:$true] %s74_s16 }
  0x11   :  { %80 = dma.hbm_to_vmem [thread:$0]  %s73_s14, 1024, %s75_s16, [#allocation9], %s490_s11, %s490_s11, %s491_s12  }
  0x12   :  { %s89_s20 = sshll.u32 %s493_s19, 4  ;;  %s90_s20 = int_to_ptr.vmem [resolvable:$true] %s89_s20 }
  0x13   :  { %95 = dma.hbm_to_vmem [thread:$0]  %s88_s18, 1024, %s90_s20, [#allocation12], %s490_s11, %s490_s11, %s491_s12  }
  0x14   :  { %476 = dma.done.wait [#allocation3], 32  }
  0x15   :  { %477 = vsyncadd [#allocation3], 4294967264 }
  0x16   :  { %478 = dma.done.wait [#allocation6], 544  }
  0x17   :  { %479 = vsyncadd [#allocation6], 4294966752 }
  0x18   :  { %480 = dma.done.wait [#allocation9], 1088  }
  0x19   :  { %481 = vsyncadd [#allocation9], 4294966208 }
  0x1a   :  { %482 = dma.done.wait [#allocation12], 1024  }
  0x1b   :  { %483 = vsyncadd [#allocation12], 4294966272  ;;  %vm135_vm0 = vcmask 1043456   ;;  %v128_v0 = vld [vmem:[#allocation7 + $0x18] sm:$0xff]  ;;  %v127_v1 = vld [vmem:[#allocation7 + $0x10] sm:$0xff]  ;;  %vm131_vm1 = vcmask 31744  }
  0x1c   :  { %175 = vmatpush.msra.mxu1 %v128_v0  ;;  %v130_v2 = vld [vmem:[#allocation8] sm:$0xf]  ;;  %v129_v3 = vld [vmem:[#allocation5] sm:$0x3]  ;;  %v126_v4 = vld [vmem:[#allocation7 + $0x8] sm:$0xff]  ;;  %vm159_vm2 = vcmask 261120  }
  0x1d   :  { %288 = vmatpush.msk.msra.mxu0 %vm135_vm0, %v130_v2  ;;  %v196_v5 = vld [vmem:[#allocation10 + $0x38] sm:$0xff]  ;;  %v195_v7 = vld [vmem:[#allocation10 + $0x30] sm:$0xff]  ;;  %v194_v9 = vld [vmem:[#allocation10 + $0x28] sm:$0xff]  ;;  %vm201_vm3 = vcmask 523264   ;;  %s494_s1 = smov [#allocation13]  }
  0x1e   :  { %176 = vmatpush.msra.mxu1 %v127_v1  ;;  %v125_v6 = vld [vmem:[#allocation7] sm:$0xff]  ;;  %289 = vmatmul.msk.f32.vlgmr.msra.gmra.mxu0 %vm131_vm1, %v129_v3  ;;  %v124_v8 = vld [vmem:[#allocation2] sm:$0x3]  ;;  %v191_v12 = vld [vmem:[#allocation10 + $0x10] sm:$0xff]  ;;  %s273_s26 = sshll.u32 %s494_s1, 4  ;;  %s274_s26 = int_to_ptr.vmem [resolvable:$true] %s273_s26 }
  0x1f   :  { %213 = vmatpush.msra.mxu2 %v196_v5  ;;  %v193_v10 = vld [vmem:[#allocation10 + $0x20] sm:$0xff]  ;;  %v192_v11 = vld [vmem:[#allocation10 + $0x18] sm:$0xff]  ;;  %v190_v13 = vld [vmem:[#allocation10 + $0x8] sm:$0xff] }
  0x20   :  { %177 = vmatpush.msra.mxu1 %v126_v4  ;;  %v189_v14 = vld [vmem:[#allocation10] sm:$0xff]  ;;  %v233_v15 = vld [vmem:[#allocation11 + $0x38] sm:$0xff]  ;;  %v232_v16 = vld [vmem:[#allocation11 + $0x30] sm:$0xff] }
  0x21   :  { %214 = vmatpush.msra.mxu2 %v195_v7  ;;  %249 = vmatpush.msra.mxu3 %v233_v15  ;;  %v231_v17 = vld [vmem:[#allocation11 + $0x28] sm:$0xff]  ;;  %v230_v18 = vld [vmem:[#allocation11 + $0x20] sm:$0xff]  ;;  %v229_v19 = vld [vmem:[#allocation11 + $0x18] sm:$0xff] }
  0x22   :  { %178 = vmatpush.msra.mxu1 %v125_v6  ;;  %v302_v21 = vld [vmem:[%s587_s4] ss:$0 sm:$0xff]  ;;  %v228_v26 = vld [vmem:[#allocation11 + $0x10] sm:$0xff]  ;;  %v227_v27 = vld [vmem:[#allocation11 + $0x8] sm:$0xff] }
  0x23   :  { %290 = vmatmul.msk.f32.vlgmr.msra.gmra.mxu1 %vm159_vm2, %v124_v8  ;;  %215 = vmatpush.msra.mxu2 %v194_v9  ;;  %v226_v28 = vld [vmem:[#allocation11] sm:$0xff]  ;;  %v303_v29 = vld [vmem:[%s589_s6] ss:$0 sm:$0xff]  ;;  %s275_s6 = sshll.u32 %s593_s10, 4  ;;  %s276_s6 = int_to_ptr.hbm [resolvable:$true] %s275_s6 }
  0x24   :  { %250 = vmatpush.msra.mxu3 %v232_v16  ;;  %v304_v33 = vld [vmem:[%s591_s8] ss:$0 sm:$0xff] }
  0x25   :  { %216 = vmatpush.msra.mxu2 %v193_v10  ;;  %v305_v36 = vld [vmem:[%s592_s9] ss:$0 sm:$0xff] }
  0x26   :  { %251 = vmatpush.msra.mxu3 %v231_v17 }
  0x27   :  { %217 = vmatpush.msra.mxu2 %v192_v11 }
  0x28   :  { %252 = vmatpush.msra.mxu3 %v230_v18 }
  0x29   :  { %218 = vmatpush.msra.mxu2 %v191_v12 }
  0x2a   :  { %253 = vmatpush.msra.mxu3 %v229_v19 }
  0x2b   :  { %219 = vmatpush.msra.mxu2 %v190_v13 }
  0x2c   :  { %254 = vmatpush.msra.mxu3 %v228_v26 }
  0x2d   :  { %220 = vmatpush.msra.mxu2 %v189_v14 }
  0x2e   :  { %255 = vmatpush.msra.mxu3 %v227_v27 }
  0x30   :  { %256 = vmatpush.msra.mxu3 %v226_v28 }
  0x9b   :  { %v156_v20 = vpop.f32.mrf.mxu0 }
  0xa0   :  { %v180_v22 = vpop.f32.mrf.mxu1 }
  0xa1   :  { %v181_v23 = vadd.f32 %v180_v22, %v156_v20 }
  0xa3   :  { %v187_v24 = vadd.f32 %v302_v21, %v181_v23 }
  0xa5   :  { %v188_v25 = vmax.f32 %v187_v24, 0.0 }
  0xa7   :  { %291 = vmatmul.msk.f32.vlgmr.msra.gmra.mxu2 %vm201_vm3, %v188_v25 }
 0x12a   :  { %v222_v30 = vpop.f32.mrf.mxu2 }
 0x12b   :  { %v223_v31 = vadd.f32 %v303_v29, %v222_v30 }
 0x12d   :  { %v225_v32 = vmax.f32 %v223_v31, 0.0 }
 0x12f   :  { %292 = vmatmul.msk.f32.vlgmr.msra.gmra.mxu3 %vm201_vm3, %v225_v32 }
 0x1b2   :  { %v258_v34 = vpop.f32.mrf.mxu3 }
 0x1b3   :  { %v259_v35 = vadd.f32 %v304_v33, %v258_v34 }
 0x1b5   :  { %306 = vtanh.f32 %v259_v35 }
 0x1bb   :  { %v307_v37 = vpop.eup %306 }
 0x1bc   :  { %v266_v38 = vmul.f32 %v307_v37, %v305_v36 }
 0x1be   :  { %267 = vst [vmem:[#allocation13] sm:$0x3] %v266_v38 }
 0x1bf   :  { %278 = dma.vmem_to_hbm [thread:$0]  %s274_s26, 32, %s276_s6, [#allocation4]  }
 0x1c0   :  { %484 = dma.done.wait [#allocation4], 32  }
 0x1c1   :  { %485 = vsyncadd [#allocation4], 4294967264 }
 0x1c2   :  { %283 = vsyncpa [#allocation3], 1 }
 0x1c3   :  { %284 = vsyncpa [#allocation6], 1 }
 0x1c4   :  { %285 = vsyncpa [#allocation9], 1 }
 0x1c5   :  { %286 = vsyncpa [#allocation12], 1 }
 0x1c6   :  { %287 = vsyncpa [#allocation4], 1 }

</bundles_post_ra>
